<compile_context>
chip_gen: v5e
topology: v5e:2x2
jax: 0.10.0
libtpu: 0.0.40
codegen_flags: <defaults>
</compile_context>

<pallas_src>
import numpy as np
import jax
import jax.numpy as jnp
from jax.experimental import pallas as pl
from jax.experimental.pallas import tpu as pltpu


# ---------------------------------------------------------------------------
# Kernel
# ---------------------------------------------------------------------------
def t5_dense_act_dense_kernel(x_ref, wi_ref, wo_ref, o_ref, acc_ref):
    k = pl.program_id(1)                 # d_ff slice index (reduction axis)

    @pl.when(k == 0)
    def _():
        acc_ref[...] = jnp.zeros_like(acc_ref)

    # hidden = relu(x @ wi[:, k_slice])  -> (tm, tff), f32 then bf16 for MXU
    h = jnp.dot(x_ref[...], wi_ref[...], preferred_element_type=jnp.float32)
    h = jnp.maximum(h, 0.0).astype(wo_ref.dtype)
    # TODO(synk): training-mode dropout (dropout_rate > 0) is not modeled;
    #             eval-mode dropout is the identity.
    acc_ref[...] += jnp.dot(h, wo_ref[...], preferred_element_type=jnp.float32)

    @pl.when(k == pl.num_programs(1) - 1)
    def _():
        o_ref[...] = acc_ref[...].astype(o_ref.dtype)


# ---------------------------------------------------------------------------
# pallas_call wrapper
# ---------------------------------------------------------------------------
def _pick_tile(dim, cap, align):
    """Largest `align`-multiple divisor of `dim` that is <= cap, else full dim."""
    cap = max(align, min(cap, dim))
    for t in range(cap - cap % align, 0, -align):
        if dim % t == 0:
            return t
    return dim


def t5_dense_act_dense(hidden_states, wi, wo, *, tm=256, tff=512,
                       compute_dtype=jnp.bfloat16):
    """hidden_states: (B, S, d_model); wi: (d_model, d_ff); wo: (d_ff, d_model).

    wi / wo are stored input-major (i.e. the transpose of the PyTorch
    nn.Linear weight).  Returns (B, S, d_model) in hidden_states.dtype.
    """
    B, S, d_model = hidden_states.shape
    d_ff = wi.shape[1]
    assert wi.shape == (d_model, d_ff) and wo.shape == (d_ff, d_model)
    out_dtype = hidden_states.dtype

    M = B * S
    tm = _pick_tile(M, tm, 8)           # token tile (sublane axis: x8 or full)
    tff = _pick_tile(d_ff, tff, 128)    # d_ff tile  (lane axis: x128 or full)

    x2 = hidden_states.reshape(M, d_model).astype(compute_dtype)
    wi_c = wi.astype(compute_dtype)
    wo_c = wo.astype(compute_dtype)

    grid = (M // tm, d_ff // tff)

    # rough VMEM budget (double-buffered inputs + output + f32 accumulator),
    # clamped well under v7x's 64 MiB physical VMEM
    esz = jnp.dtype(compute_dtype).itemsize
    vmem_bytes = 2 * (tm * d_model + d_model * tff + tff * d_model) * esz \
        + tm * d_model * (jnp.dtype(out_dtype).itemsize + 4) + (4 << 20)
    vmem_bytes = int(min(max(vmem_bytes, 16 << 20), 48 << 20))

    out = pl.pallas_call(
        t5_dense_act_dense_kernel,
        out_shape=jax.ShapeDtypeStruct((M, d_model), out_dtype),
        grid_spec=pltpu.PrefetchScalarGridSpec(
            num_scalar_prefetch=0,
            grid=grid,
            in_specs=[
                # x token tile
                pl.BlockSpec((tm, d_model), lambda i, k: (i, 0)),
                # wi[:, k*tff:(k+1)*tff]
                pl.BlockSpec((d_model, tff), lambda i, k: (0, k)),
                # wo[k*tff:(k+1)*tff, :]
                pl.BlockSpec((tff, d_model), lambda i, k: (k, 0)),
            ],
            out_specs=pl.BlockSpec((tm, d_model), lambda i, k: (i, 0)),
            scratch_shapes=[pltpu.VMEM((tm, d_model), jnp.float32)],
        ),
        compiler_params=pltpu.CompilerParams(
            dimension_semantics=("parallel", "arbitrary"),
            vmem_limit_bytes=vmem_bytes),
    )(x2, wi_c, wo_c)

    return out.reshape(B, S, d_model)


# ---------------------------------------------------------------------------
# Pure-JAX reference (same bf16 casts / accumulation dtype as the kernel)
# ---------------------------------------------------------------------------
def t5_dense_act_dense_ref(hidden_states, wi, wo, *, compute_dtype=jnp.bfloat16):
    x = hidden_states.astype(compute_dtype)
    h = jnp.dot(x, wi.astype(compute_dtype), preferred_element_type=jnp.float32)
    h = jnp.maximum(h, 0.0).astype(compute_dtype)
    y = jnp.dot(h, wo.astype(compute_dtype), preferred_element_type=jnp.float32)
    return y.astype(hidden_states.dtype)


if __name__ == "__main__":
    key = jax.random.PRNGKey(0)

    # small config consistent with the module
    B, S, d_model, d_ff = 2, 8, 32, 64

    k_x, k_wi, k_wo = jax.random.split(key, 3)
    hidden_states = jax.random.normal(k_x, (B, S, d_model), dtype=jnp.float32)
    # input-major weights (= transpose of PyTorch nn.Linear .weight)
    wi = jax.random.normal(k_wi, (d_model, d_ff), dtype=jnp.float32) \
        * (1.0 / np.sqrt(d_model))
    wo = jax.random.normal(k_wo, (d_ff, d_model), dtype=jnp.float32) \
        * (1.0 / np.sqrt(d_ff))

    out = t5_dense_act_dense(hidden_states, wi, wo)
    out = jax.block_until_ready(out)

    ref = t5_dense_act_dense_ref(hidden_states, wi, wo)
    np.testing.assert_allclose(np.asarray(out), np.asarray(ref),
                               rtol=1e-2, atol=1e-2)

    print("KERNEL_OK")
</pallas_src>

<mosaic_0001>
module attributes {stable_mosaic.version = 11 : i64} {
  func.func @t5_dense_act_dense_kernel(%arg0: i32, %arg1: i32, %arg2: memref<16x32xbf16, #tpu.memory_space<vmem>>, %arg3: memref<32x64xbf16, #tpu.memory_space<vmem>>, %arg4: memref<64x32xbf16, #tpu.memory_space<vmem>>, %arg5: memref<16x32xf32, #tpu.memory_space<vmem>>, %arg6: memref<16x32xf32, #tpu.memory_space<vmem>>) attributes {dimension_semantics = [#tpu.dimension_semantics<parallel>, #tpu.dimension_semantics<arbitrary>], iteration_bounds = array<i64: 1, 1>, scalar_prefetch = 0 : i64, scratch_operands = 1 : i64, tpu.core_type = #tpu.core_type<tc>, window_params = [{transform_indices = @transform_0, window_bounds = array<i64: 16, 32>}, {transform_indices = @transform_1, window_bounds = array<i64: 32, 64>}, {transform_indices = @transform_2, window_bounds = array<i64: 64, 32>}, {transform_indices = @transform_3, window_bounds = array<i64: 16, 32>}]} {
    %c0_i32 = arith.constant 0 : i32
    %0 = arith.cmpi eq, %arg1, %c0_i32 : i32
    %1 = arith.extui %0 : i1 to i32
    %c0_i32_0 = arith.constant 0 : i32
    %2 = arith.cmpi ne, %1, %c0_i32_0 : i32
    scf.if %2 {
      %cst_14 = arith.constant 0.000000e+00 : f32
      %17 = vector.broadcast %cst_14 : f32 to vector<16x32xf32>
      %c0_15 = arith.constant 0 : index
      %c0_16 = arith.constant 0 : index
      %18 = vector.load %arg6[%c0_15, %c0_16] : memref<16x32xf32, #tpu.memory_space<vmem>>, vector<16x32xf32>
      tpu.vector_store %arg6[%c0_15, %c0_16], %17 {strides = array<i32>} : memref<16x32xf32, #tpu.memory_space<vmem>>, vector<16x32xf32>,
    } else {
    }
    %c0 = arith.constant 0 : index
    %c0_1 = arith.constant 0 : index
    %3 = vector.load %arg2[%c0, %c0_1] : memref<16x32xbf16, #tpu.memory_space<vmem>>, vector<16x32xbf16>
    %c0_2 = arith.constant 0 : index
    %c0_3 = arith.constant 0 : index
    %4 = vector.load %arg3[%c0_2, %c0_3] : memref<32x64xbf16, #tpu.memory_space<vmem>>, vector<32x64xbf16>
    %cst = arith.constant dense<0.000000e+00> : vector<16x64xf32>
    %5 = tpu.matmul %3, %4, %cst {dimension_numbers = #tpu.dot_dimension_numbers<[1], [0], [0], [1], [0, 0, 1, 1], [], []>} : vector<16x32xbf16>, vector<32x64xbf16>, vector<16x64xf32> -> vector<16x64xf32>
    %cst_4 = arith.constant 0.000000e+00 : f32
    %6 = vector.broadcast %cst_4 : f32 to vector<16x64xf32>
    %7 = arith.maximumf %5, %6 : vector<16x64xf32>
    %8 = arith.truncf %7 : vector<16x64xf32> to vector<16x64xbf16>
    %c0_5 = arith.constant 0 : index
    %c0_6 = arith.constant 0 : index
    %9 = vector.load %arg6[%c0_5, %c0_6] : memref<16x32xf32, #tpu.memory_space<vmem>>, vector<16x32xf32>
    %c0_7 = arith.constant 0 : index
    %c0_8 = arith.constant 0 : index
    %10 = vector.load %arg4[%c0_7, %c0_8] : memref<64x32xbf16, #tpu.memory_space<vmem>>, vector<64x32xbf16>
    %cst_9 = arith.constant dense<0.000000e+00> : vector<16x32xf32>
    %11 = tpu.matmul %8, %10, %cst_9 {dimension_numbers = #tpu.dot_dimension_numbers<[1], [0], [0], [1], [0, 0, 1, 1], [], []>} : vector<16x64xbf16>, vector<64x32xbf16>, vector<16x32xf32> -> vector<16x32xf32>
    %12 = arith.addf %9, %11 : vector<16x32xf32>
    %c0_10 = arith.constant 0 : index
    %c0_11 = arith.constant 0 : index
    %13 = vector.load %arg6[%c0_10, %c0_11] : memref<16x32xf32, #tpu.memory_space<vmem>>, vector<16x32xf32>
    tpu.vector_store %arg6[%c0_10, %c0_11], %12 {strides = array<i32>} : memref<16x32xf32, #tpu.memory_space<vmem>>, vector<16x32xf32>,
    %c0_i32_12 = arith.constant 0 : i32
    %14 = arith.cmpi eq, %arg1, %c0_i32_12 : i32
    %15 = arith.extui %14 : i1 to i32
    %c0_i32_13 = arith.constant 0 : i32
    %16 = arith.cmpi ne, %15, %c0_i32_13 : i32
    scf.if %16 {
      %c0_14 = arith.constant 0 : index
      %c0_15 = arith.constant 0 : index
      %17 = vector.load %arg6[%c0_14, %c0_15] : memref<16x32xf32, #tpu.memory_space<vmem>>, vector<16x32xf32>
      %c0_16 = arith.constant 0 : index
      %c0_17 = arith.constant 0 : index
      %18 = vector.load %arg5[%c0_16, %c0_17] : memref<16x32xf32, #tpu.memory_space<vmem>>, vector<16x32xf32>
      tpu.vector_store %arg5[%c0_16, %c0_17], %17 {strides = array<i32>} : memref<16x32xf32, #tpu.memory_space<vmem>>, vector<16x32xf32>,
    } else {
    }
    return
  }
  func.func @transform_0(%arg0: i32, %arg1: i32) -> (i32, i32) {
    %c0_i32 = arith.constant 0 : i32
    %c0_i32_0 = arith.constant 0 : i32
    return %arg0, %c0_i32 : i32, i32
  }
  func.func @transform_1(%arg0: i32, %arg1: i32) -> (i32, i32) {
    %c0_i32 = arith.constant 0 : i32
    %c0_i32_0 = arith.constant 0 : i32
    return %c0_i32, %arg1 : i32, i32
  }
  func.func @transform_2(%arg0: i32, %arg1: i32) -> (i32, i32) {
    %c0_i32 = arith.constant 0 : i32
    %c0_i32_0 = arith.constant 0 : i32
    return %arg1, %c0_i32 : i32, i32
  }
  func.func @transform_3(%arg0: i32, %arg1: i32) -> (i32, i32) {
    %c0_i32 = arith.constant 0 : i32
    %c0_i32_0 = arith.constant 0 : i32
    return %arg0, %c0_i32 : i32, i32
  }
}

</mosaic_0001>

<bundles_post_ra>
// kernel: tpu_custom_call.1
= control target key start
LH: loop header
LB: loop body
LE: loop exit
PB: predicated region body
PF: predicated region fallthrough
CT: control target
= control target key end

     0   :  { %s270_s0 = inlined_call_operand.vmem [shape: bf16[16,32], index: 0, kind: input, shape index: {}]   ;;  %s271_s1 = inlined_call_operand.vmem [shape: bf16[32,64], index: 1, kind: input, shape index: {}]   ;;  %s272_s2 = inlined_call_operand.vmem [shape: bf16[64,32], index: 2, kind: input, shape index: {}]   ;;  %s273_s3 = inlined_call_operand.hbm [shape: f32[16,32], index: 3, kind: output, shape index: {}]  }
   0x1   :  { %v180_v0 = vld [vmem:[%s271_s1 + $0x8] sm:$0xff]  ;;  %v184_v1 = vld [vmem:[%s272_s2 + $0x18] sm:$0xff] }
   0x2   :  { %8 = vsyncpa [#allocation4], 0  ;;  %56 = vmatpush.bf16.msra.mxu0 %v180_v0  ;;  %v179_v2 = vld [vmem:[%s271_s1] sm:$0xff]  ;;  %109 = vmatpush.bf16.msra.mxu1 %v184_v1  ;;  %vm20_vm0 = vcmask 261120   ;;  %v183_v4 = vld [vmem:[%s272_s2 + $0x10] sm:$0xff]  ;;  %v215_v7 = vmov 0.0  }
   0x3   :  { %v178_v3 = vld [vmem:[%s270_s0] sm:$0xff]  ;;  %v182_v5 = vld [vmem:[%s272_s2 + $0x8] sm:$0xff]  ;;  %21 = vst.msk [vmem:[#allocation2] sm:$0xff] %vm20_vm0, %v215_v7  ;;  %vm101_vm1 = vcmask 523264   ;;  %s216_s0 = smov [#allocation3]   ;;  %s136_s27 = sshll.u32 %s273_s3, 4  ;;  %s137_s27 = int_to_ptr.hbm [resolvable:$true] %s136_s27 }
   0x4   :  { %v181_v6 = vld [vmem:[%s272_s2] sm:$0xff]  ;;  %22 = vst.msk [vmem:[#allocation2 + $0x8] sm:$0xff] %vm20_vm0, %v215_v7  ;;  %s134_s2 = sshll.u32 %s216_s0, 4  ;;  %s217_s28 = smov 128   ;;  %s135_s2 = int_to_ptr.vmem [resolvable:$true] %s134_s2 }
   0x5   :  { %s218_s29 = smov 8  }
   0x6   :  { %57 = vmatpush.bf16.msra.mxu0 %v179_v2  ;;  %110 = vmatpush.bf16.msra.mxu1 %v183_v4 }
   0x9   :  { %160 = vmatmul.msk.bf16.vlgmr.msra.gmra.mxu0 %vm20_vm0, %v178_v3 }
   0xa   :  { %111 = vmatpush.bf16.msra.mxu1 %v182_v5  ;;  %v67_v13 = vld [vmem:[#allocation2] sm:$0xff] }
   0xb   :  { %v68_v16 = vld [vmem:[#allocation2 + $0x8] sm:$0xff] }
   0xe   :  { %112 = vmatpush.bf16.msra.mxu1 %v181_v6 }
  0x86   :  { %v59_v8 = vpop.f32.mrf.mxu0 }
  0x87   :  { %v64_v10 = vmax.f32 %v59_v8, 0.0 }
  0x8e   :  { %v61_v9 = vpop.f32.mrf.mxu0 }
  0x8f   :  { %v65_v11 = vmax.f32 %v61_v9, 0.0 }
  0x91   :  { %v66_v12 = vpack.c.bf16 %v65_v11, %v64_v10 }
  0x93   :  { %177 = vmatmul.msk.bf16.vlgmr.msra.gmra.mxu1 %vm101_vm1, %v66_v12 }
 0x110   :  { %v114_v14 = vpop.f32.mrf.mxu1 }
 0x111   :  { %v119_v15 = vadd.f32 %v114_v14, %v67_v13 }
 0x113   :  { %121 = vst.msk [vmem:[#allocation2] sm:$0xff] %vm20_vm0, %v119_v15 }
 0x118   :  { %v116_v17 = vpop.f32.mrf.mxu1 }
 0x119   :  { %v120_v18 = vadd.f32 %v116_v17, %v68_v16 }
 0x11a   :  { %v126_v19 = vld [vmem:[#allocation2] sm:$0xff] }
 0x11b   :  { %122 = vst.msk [vmem:[#allocation2 + $0x8] sm:$0xff] %vm20_vm0, %v120_v18 }
 0x11c   :  { %128 = vst.msk [vmem:[#allocation3] sm:$0xff] %vm20_vm0, %v126_v19 }
 0x122   :  { %v127_v20 = vld [vmem:[#allocation2 + $0x8] sm:$0xff] }
 0x123   :  { %129 = vst.msk [vmem:[#allocation3 + $0x8] sm:$0xff] %vm20_vm0, %v127_v20 }
 0x124   :  { %142 = dma.vmem_to_hbm [thread:$0]  %s135_s2, 256, %s137_s27, [#allocation4], %s217_s28, %s217_s28, %s218_s29  }
 0x125   :  { %213 = dma.done.wait [#allocation4], 256  }
 0x126   :  { %214 = vsyncadd [#allocation4], 4294967040 }
 0x127   :  { %147 = vsyncpa [#allocation4], 1 }

</bundles_post_ra>
